<compile_context>
chip_gen: v6e
topology: v6e:2x2x1
jax: 0.10.0
libtpu: 0.0.40
codegen_flags: <defaults>
</compile_context>

<pallas_src>
import jax
import jax.numpy as jnp
from jax import lax
from jax.experimental import pallas as pl
from jax.experimental.pallas import tpu as pltpu


# ----------------------------------------------------------------------------
# Pallas kernel:  out = W @ (x * gate) + bias + x   on a (dim, THW) block
# ----------------------------------------------------------------------------
def _mplb_kernel(x_ref, g_ref, w_ref, b_ref, o_ref):
    x = x_ref[...]                                   # (dim, THW), compute dtype
    gated = x * g_ref[...]                           # per-branch gating (VPU)
    y = jnp.dot(w_ref[...], gated,                   # 1x1 conv == (dim,dim) @ (dim,THW) on MXU
                preferred_element_type=jnp.float32)  # f32 accumulation
    # bias (dim,1) broadcast + residual; promote to f32, cast once on store
    o_ref[...] = (y + b_ref[...] + x).astype(o_ref.dtype)


def _round_down_128(n):
    return max(128, (n // 128) * 128)


def _round_up_128(n):
    return ((n + 127) // 128) * 128


def _plan_tiles(hw_padded, dim, batch, x_itemsize, w_itemsize):
    """Pick THW (multiple of 128) + vmem limit under a v7x-safe (64 MiB) budget."""
    # Single-buffer the constant-index W/bias only when W is big enough to matter
    # (keeps the small-dim path on the plain, battle-tested BlockSpec).
    big_w = dim * dim * w_itemsize >= (1 << 20)
    w_bufs = 1 if big_w else 2
    const_bytes = w_bufs * (dim * dim * w_itemsize) + 2 * dim * 4          # W + bias buffers
    budget = 40 * 1024 * 1024                                              # headroom within v7x 64 MiB
    avail = max(budget - const_bytes, 1 << 20)
    per_col = 2 * 3 * dim * x_itemsize                                     # dbl-buffered x, gate, out cols
    thw = min(hw_padded, 16384, _round_down_128(avail // per_col))
    thw = _round_down_128(thw)
    # v7x has 2 TensorCores: make sure B==1 single-tile shapes still give >=2 parallel
    # grid steps so both cores get work.  No-op for B>=2 or multi-tile HW.
    if batch == 1 and thw >= hw_padded and hw_padded >= 256:
        thw = _round_up_128(-(-hw_padded // 2))
    footprint = per_col * thw + const_bytes
    vmem_limit = int(min(48 << 20, max(32 << 20, footprint + footprint // 4 + (2 << 20))))
    return thw, vmem_limit, big_w


def _mplb_pallas(x_b3, gate, w_oi, bias_col, *, thw, vmem_limit, big_w):
    """x_b3: (B, dim, HWp); gate: (dim, HWp); w_oi: (dim, dim); bias_col: (dim, 1) f32."""
    b, dim, hwp = x_b3.shape
    num_t = pl.cdiv(hwp, thw)

    if big_w:
        # Constant block index -> a single buffer is enough; halves W's VMEM cost for
        # large dim (matters on v7x's 64 MiB VMEM).
        w_spec = pl.BlockSpec((dim, dim), lambda ti, bi: (0, 0), pipeline_mode=pl.Buffered(1))
        b_spec = pl.BlockSpec((dim, 1), lambda ti, bi: (0, 0), pipeline_mode=pl.Buffered(1))
    else:
        w_spec = pl.BlockSpec((dim, dim), lambda ti, bi: (0, 0))
        b_spec = pl.BlockSpec((dim, 1), lambda ti, bi: (0, 0))

    return pl.pallas_call(
        _mplb_kernel,
        out_shape=jax.ShapeDtypeStruct((b, dim, hwp), x_b3.dtype),
        grid_spec=pltpu.PrefetchScalarGridSpec(
            num_scalar_prefetch=0,
            # Batch is the innermost (fastest-varying) grid axis: the gate block index
            # (0, ti) is unchanged across consecutive steps, so Pallas skips re-fetching
            # the gate tile for every batch element.
            grid=(num_t, b),
            in_specs=[
                pl.BlockSpec((None, dim, thw), lambda ti, bi: (bi, 0, ti)),   # x
                pl.BlockSpec((dim, thw), lambda ti, bi: (0, ti)),             # gate (batch-invariant)
                w_spec,                                                        # W (out, in), resident
                b_spec,                                                        # bias (dim, 1), resident
            ],
            out_specs=pl.BlockSpec((None, dim, thw), lambda ti, bi: (bi, 0, ti)),
        ),
        compiler_params=pltpu.CompilerParams(
            dimension_semantics=("parallel", "parallel"),
            vmem_limit_bytes=vmem_limit),
    )(x_b3, gate, w_oi, bias_col)


# ----------------------------------------------------------------------------
# Parameter-only glue: bilinear (align_corners=True) interpolation + depthwise convs.
# Tiny (C,16,16)-ish tensors, batch/HW independent -> computed once in plain JAX.
# ----------------------------------------------------------------------------
def _interp_bilinear_align_corners(img, out_h, out_w):
    """img: (..., H_in, W_in) -> (..., out_h, out_w); matches F.interpolate(align_corners=True)."""
    h_in, w_in = img.shape[-2], img.shape[-1]

    def coords(out_n, in_n):
        if out_n == 1:
            idx = jnp.zeros((1,), jnp.int32)
            return jnp.zeros((1,), jnp.float32), idx, idx
        src = jnp.arange(out_n, dtype=jnp.float32) * (in_n - 1) / (out_n - 1)
        lo = jnp.clip(jnp.floor(src).astype(jnp.int32), 0, in_n - 1)
        hi = jnp.clip(lo + 1, 0, in_n - 1)
        return src - lo.astype(jnp.float32), lo, hi

    fh, hlo, hhi = coords(out_h, h_in)
    fw, wlo, whi = coords(out_w, w_in)
    top, bot = img[..., hlo, :], img[..., hhi, :]
    rows = top * (1.0 - fh)[:, None] + bot * fh[:, None]
    left, right = rows[..., :, wlo], rows[..., :, whi]
    return left * (1.0 - fw) + right * fw


def _depthwise_conv2d(x, w):
    # x: (1, C, H, W), w: (C, 1, 3, 3), padding=1, groups=C, no bias
    return lax.conv_general_dilated(
        x, w, window_strides=(1, 1), padding=((1, 1), (1, 1)),
        dimension_numbers=("NCHW", "OIHW", "NCHW"),
        feature_group_count=x.shape[1])


def _depthwise_conv1d(x, w):
    # x: (1, C, L), w: (C, 1, 3), padding=1, groups=C, no bias
    return lax.conv_general_dilated(
        x, w, window_strides=(1,), padding=((1, 1),),
        dimension_numbers=("NCH", "OIH", "NCH"),
        feature_group_count=x.shape[1])


def init_mplb_params(key, dim, size=(16, 16)):
    assert dim % 3 == 0, "dim must be divisible by 3 (torch.chunk(.., 3, dim=1))"
    c = dim // 3
    k1, k2, k3, k4, k5 = jax.random.split(key, 5)

    def u(k, shp, fan_in):
        bound = float(fan_in) ** -0.5
        return jax.random.uniform(k, shp, jnp.float32, -bound, bound)

    return {
        "hw": jnp.ones((1, c, size[0], size[1]), jnp.float32),
        "ch": jnp.ones((1, 1, c, size[0]), jnp.float32),
        "cw": jnp.ones((1, 1, c, size[1]), jnp.float32),
        "w_hw": u(k1, (c, 1, 3, 3), 9.0),        # depthwise 3x3
        "w_ch": u(k2, (c, 1, 3), 3.0),           # depthwise 1D over H
        "w_cw": u(k3, (c, 1, 3), 3.0),           # depthwise 1D over W
        "w4":   u(k4, (dim, dim), float(dim)),   # conv_4.weight[:, :, 0, 0]  (out, in)
        "b4":   u(k5, (dim,), float(dim)),       # conv_4.bias
    }


def _compute_gates(params, h, w):
    """Gates depend only on parameters + (H, W); returns (g1:(C,H,W), g2:(C,H), g3:(C,W))."""
    c = params["hw"].shape[1]
    hw_i = _interp_bilinear_align_corners(params["hw"], h, w)          # (1, C, H, W)
    g1 = _depthwise_conv2d(hw_i, params["w_hw"])[0]                    # (C, H, W)
    ch_i = _interp_bilinear_align_corners(params["ch"], c, h)[0]       # (1, C, H)
    g2 = _depthwise_conv1d(ch_i, params["w_ch"])[0]                    # (C, H)
    cw_i = _interp_bilinear_align_corners(params["cw"], c, w)[0]       # (1, C, W)
    g3 = _depthwise_conv1d(cw_i, params["w_cw"])[0]                    # (C, W)
    return g1, g2, g3


# ----------------------------------------------------------------------------
# Forward (NCHW interface, matching the PyTorch module)
# ----------------------------------------------------------------------------
def mplb_forward(x_nchw, params, compute_dtype=None):
    b, dim, h, w = x_nchw.shape
    assert dim % 3 == 0
    c = dim // 3
    cdt = jnp.dtype(compute_dtype) if compute_dtype is not None else x_nchw.dtype

    g1, g2, g3 = _compute_gates(params, h, w)
    # Full per-(channel, h, w) gate mirroring the three branches (batch-independent).
    gate = jnp.concatenate([
        g1,                                             # x1[b,c,h,w] *= g1[c,h,w]
        jnp.broadcast_to(g2[:, :, None], (c, h, w)),    # x2[b,c,h,w] *= g2[c,h]
        jnp.broadcast_to(g3[:, None, :], (c, h, w)),    # x3[b,c,h,w] *= g3[c,w]
    ], axis=0).reshape(dim, h * w)                      # (dim, HW)

    hw = h * w
    hwp = _round_up_128(hw)
    x3d = x_nchw.reshape(b, dim, hw).astype(cdt)        # free reshape, stays NCHW
    gate = gate.astype(cdt)
    if hwp != hw:
        # Keep output stores lane-dense (last dim a multiple of 128); pad sliced off below.
        x3d = jnp.pad(x3d, ((0, 0), (0, 0), (0, hwp - hw)))
        gate = jnp.pad(gate, ((0, 0), (0, hwp - hw)))

    itemsize = jnp.dtype(cdt).itemsize
    thw, vmem_limit, big_w = _plan_tiles(hwp, dim, b, itemsize, itemsize)

    out3d = _mplb_pallas(
        x3d,
        gate,
        params["w4"].astype(cdt),                       # (out, in)
        params["b4"].astype(jnp.float32).reshape(dim, 1),
        thw=thw, vmem_limit=vmem_limit, big_w=big_w)

    if hwp != hw:
        out3d = out3d[..., :hw]
    return out3d.reshape(b, dim, h, w)


# Pure-JAX reference (mirrors the PyTorch forward) for a correctness check.
def mplb_reference(x_nchw, params):
    b, dim, h, w = x_nchw.shape
    c = dim // 3
    g1, g2, g3 = _compute_gates(params, h, w)
    x1 = x_nchw[:, :c] * g1[None]
    x2 = x_nchw[:, c:2 * c] * g2[None, :, :, None]
    x3 = x_nchw[:, 2 * c:] * g3[None, :, None, :]
    gated = jnp.concatenate([x1, x2, x3], axis=1)
    y = jnp.einsum("oc,bchw->bohw", params["w4"], gated,
                   precision=lax.Precision.HIGHEST)
    y = y + params["b4"][None, :, None, None]
    return y + x_nchw


if __name__ == "__main__":
    key = jax.random.PRNGKey(0)
    k_param, k_x = jax.random.split(key)

    B, DIM, H, W = 2, 24, 16, 16          # dim divisible by 3; size matches (16, 16) params
    params = init_mplb_params(k_param, DIM, size=(16, 16))
    x = jax.random.normal(k_x, (B, DIM, H, W), jnp.float32)

    ref = mplb_reference(x, params)

    # f32 path: tight correctness check against the pure-JAX reference.
    out_f32 = jax.block_until_ready(mplb_forward(x, params))
    assert out_f32.shape == (B, DIM, H, W) and out_f32.dtype == jnp.float32
    assert jnp.allclose(out_f32, ref, atol=1e-3, rtol=1e-3), "f32 Pallas output mismatch vs reference"

    # bf16 path (halves HBM traffic on this bandwidth-bound kernel): loose check.
    out_bf16 = jax.block_until_ready(mplb_forward(x, params, compute_dtype=jnp.bfloat16))
    assert out_bf16.dtype == jnp.bfloat16
    assert jnp.allclose(out_bf16.astype(jnp.float32), ref, atol=1e-1, rtol=5e-2), \
        "bf16 Pallas output mismatch vs reference"

    print("KERNEL_OK")
</pallas_src>

<mosaic_0001>
module attributes {stable_mosaic.version = 11 : i64} {
  func.func @_mplb_kernel(%arg0: i32, %arg1: i32, %arg2: memref<1x24x256xf32, #tpu.memory_space<vmem>>, %arg3: memref<24x256xf32, #tpu.memory_space<vmem>>, %arg4: memref<24x24xf32, #tpu.memory_space<vmem>>, %arg5: memref<24x1xf32, #tpu.memory_space<vmem>>, %arg6: memref<1x24x256xf32, #tpu.memory_space<vmem>>) attributes {dimension_semantics = [#tpu.dimension_semantics<parallel>, #tpu.dimension_semantics<parallel>], iteration_bounds = array<i64: 1, 2>, scalar_prefetch = 0 : i64, scratch_operands = 0 : i64, tpu.core_type = #tpu.core_type<tc>, window_params = [{transform_indices = @transform_0, window_bounds = array<i64: 1, 24, 256>}, {transform_indices = @transform_1, window_bounds = array<i64: 24, 256>}, {pipeline_mode = #tpu.pipeline_mode<synchronous>, transform_indices = @transform_2, window_bounds = array<i64: 24, 24>}, {pipeline_mode = #tpu.pipeline_mode<synchronous>, transform_indices = @transform_3, window_bounds = array<i64: 24, 1>}, {transform_indices = @transform_4, window_bounds = array<i64: 1, 24, 256>}]} {
    %c0 = arith.constant 0 : index
    %c0_0 = arith.constant 0 : index
    %c0_1 = arith.constant 0 : index
    %0 = vector.load %arg2[%c0, %c0_0, %c0_1] : memref<1x24x256xf32, #tpu.memory_space<vmem>>, vector<1x24x256xf32>
    %1 = vector.shape_cast %0 : vector<1x24x256xf32> to vector<24x256xf32>
    %c0_2 = arith.constant 0 : index
    %c0_3 = arith.constant 0 : index
    %2 = vector.load %arg3[%c0_2, %c0_3] : memref<24x256xf32, #tpu.memory_space<vmem>>, vector<24x256xf32>
    %3 = arith.mulf %1, %2 : vector<24x256xf32>
    %c0_4 = arith.constant 0 : index
    %c0_5 = arith.constant 0 : index
    %4 = vector.load %arg4[%c0_4, %c0_5] : memref<24x24xf32, #tpu.memory_space<vmem>>, vector<24x24xf32>
    %cst = arith.constant dense<0.000000e+00> : vector<24x256xf32>
    %5 = tpu.matmul %4, %3, %cst {dimension_numbers = #tpu.dot_dimension_numbers<[1], [0], [0], [1], [0, 0, 1, 1], [], []>} : vector<24x24xf32>, vector<24x256xf32>, vector<24x256xf32> -> vector<24x256xf32>
    %c0_6 = arith.constant 0 : index
    %c0_7 = arith.constant 0 : index
    %6 = vector.load %arg5[%c0_6, %c0_7] : memref<24x1xf32, #tpu.memory_space<vmem>>, vector<24x1xf32>
    %7 = vector.broadcast %6 : vector<24x1xf32> to vector<24x256xf32>
    %8 = arith.addf %5, %7 : vector<24x256xf32>
    %9 = arith.addf %8, %1 : vector<24x256xf32>
    %c0_8 = arith.constant 0 : index
    %c0_9 = arith.constant 0 : index
    %c0_10 = arith.constant 0 : index
    %10 = vector.load %arg6[%c0_8, %c0_9, %c0_10] : memref<1x24x256xf32, #tpu.memory_space<vmem>>, vector<1x24x256xf32>
    %11 = vector.shape_cast %10 : vector<1x24x256xf32> to vector<24x256xf32>
    %12 = vector.shape_cast %9 : vector<24x256xf32> to vector<1x24x256xf32>
    tpu.vector_store %arg6[%c0_8, %c0_9, %c0_10], %12 {strides = array<i32>} : memref<1x24x256xf32, #tpu.memory_space<vmem>>, vector<1x24x256xf32>,
    return
  }
  func.func @transform_0(%arg0: i32, %arg1: i32) -> (i32, i32, i32) {
    %c0_i32 = arith.constant 0 : i32
    %c0_i32_0 = arith.constant 0 : i32
    return %arg1, %c0_i32, %arg0 : i32, i32, i32
  }
  func.func @transform_1(%arg0: i32, %arg1: i32) -> (i32, i32) {
    %c0_i32 = arith.constant 0 : i32
    %c0_i32_0 = arith.constant 0 : i32
    return %c0_i32, %arg0 : i32, i32
  }
  func.func @transform_2(%arg0: i32, %arg1: i32) -> (i32, i32) {
    %c0_i32 = arith.constant 0 : i32
    %c0_i32_0 = arith.constant 0 : i32
    %c0_i32_1 = arith.constant 0 : i32
    return %c0_i32, %c0_i32_0 : i32, i32
  }
  func.func @transform_3(%arg0: i32, %arg1: i32) -> (i32, i32) {
    %c0_i32 = arith.constant 0 : i32
    %c0_i32_0 = arith.constant 0 : i32
    %c0_i32_1 = arith.constant 0 : i32
    return %c0_i32, %c0_i32_0 : i32, i32
  }
  func.func @transform_4(%arg0: i32, %arg1: i32) -> (i32, i32, i32) {
    %c0_i32 = arith.constant 0 : i32
    %c0_i32_0 = arith.constant 0 : i32
    return %arg1, %c0_i32, %arg0 : i32, i32, i32
  }
}

</mosaic_0001>

<bundles_post_ra>
// kernel: tpu_custom_call.1
= control target key start
LH: loop header
LB: loop body
LE: loop exit
PB: predicated region body
PF: predicated region fallthrough
CT: control target
= control target key end

     0   :  { %9 = vsyncpa [#allocation3], 0  ;;  %s1009_s0 = inlined_call_operand.hbm [shape: f32[2,24,256], index: 0, kind: input, shape index: {}]   ;;  %s1010_s1 = inlined_call_operand.hbm [shape: f32[24,256], index: 1, kind: input, shape index: {}]   ;;  %s1011_s2 = inlined_call_operand.vmem [shape: f32[24,24], index: 2, kind: input, shape index: {}]   ;;  %s1012_s3 = inlined_call_operand.vmem [shape: f32[24,1], index: 3, kind: input, shape index: {}]   ;;  %s1013_s4 = inlined_call_operand.hbm [shape: f32[2,24,256], index: 4, kind: output, shape index: {}]  }
   0x1   :  { %11 = vsyncpa [#allocation3 + $0x1], 0 }
   0x2   :  { %12 = vsyncpa [#allocation6], 0 }
   0x3   :  { %13 = vsyncpa [#allocation4], 0 }
   0x4   :  { %15 = vsyncpa [#allocation4 + $0x1], 0  ;;  %s798_s15 = smov 0   ;;  %s800_s16 = smov 0  }
   0x5   :  { %s802_s17 = smov 0   ;;  %s804_s18 = smov 0  }
   0x6   :  { %s806_s19 = smov 0   ;;  %s808_s20 = smov 0  }
   0x7 LB: > { %s519_s21 = sadd.s32 4294967295, %s762_s20   ;;  %s520_s22 = sadd.s32 4294967294, %s762_s20   ;;  %s762_s20 = sphi %s808_s20, %s21_s20   ;;  %s758_s19 = sphi %s806_s19, %s1031_s19   ;;  %s754_s18 = sphi %s804_s18, %s1030_s18   ;;  %s750_s17 = sphi %s802_s17, %s1029_s17   ;;  %s746_s16 = sphi %s800_s16, %s1028_s16   ;;  %s742_s15 = sphi %s798_s15, %s1027_s15  }
   0x8   : > { %p55_p0 = scmp.ne.s32.totalorder %s746_s16, %s742_s15  ;;  %p832_p1 = scmp.eq.s32.totalorder %s519_s21, 0 }
   0x9   : > { %p836_p2 = scmp.eq.s32.totalorder %s519_s21, 1  ;;  %p155_p3 = scmp.eq.s32.totalorder %s520_s22, 1 }
   0xa   : > { %p842_p4 = por %p832_p1, %p55_p0  ;;  %p521_p5 = scmp.ge.s32.totalorder %s762_s20, 1 }
   0xb   : > { %p847_p6 = por %p155_p3, %p55_p0  ;;  %p162_p7 = scmp.lt.s32.totalorder %s762_s20, 3 }
   0xc   : > { %s1018_s25 = scalar_select %p842_p4, 1, 0 }
   0xd   : > { %s1019_s26 = scalar_select %p847_p6, 1, 0 }
   0xe   : > { %p852_p8 = pnand %p521_p5, %p162_p7  ;;  %s764_s28 = smov [#allocation5]  }
   0xf   : > { %s177_s29 = sshll.u32 %s764_s28, 4  ;;  %p523_p10 = scmp.ge.s32.totalorder %s762_s20, 2  ;;  %s178_s29 = int_to_ptr.vmem [resolvable:$true] %s177_s29 }
  0x10   : > { %p551_p9 = pneg %p852_p8  ;;  %s30_s5 = sadd.s32 1, %s758_s19 }
  0x11   : > { %s635_s6 = scalar_lea.vmem %s178_s29, 768  ;;  %p643_p5 = scmp.lt.s32.totalorder %s178_s29, %s178_s29 }
  0x12   : > { %p861_p11 = pnand %p551_p9, %p832_p1  ;;  %p636_p13 = scmp.ne.s32.totalorder %s178_s29, %s635_s6 }
  0x13   : > { %p644_p7 = scmp.lt.s32.totalorder %s635_s6, %s635_s6 }
  0x14   : > { %p626_p12 = pneg %p861_p11 }
  0x15   : > { %p645_p6 = por %p644_p7, %p643_p5 }
  0x16   : > { %p638_p0 = pnand %p636_p13, %p626_p12 }
  0x18   : > { %p639_p3 = pneg %p638_p0 }
  0x1a   : > { %p646_p4 = pnand %p645_p6, %p639_p3 }
  0x1c   : > { %649 = shalt.err (!%p646_p4)
}
  0x1d   : > { %s1015_s7 = smov 256   ;;  %s766_s8 = smov 16  }
  0x1e   : > { %554 = dma.hbm_to_vmem [thread:$0]  (!%p861_p11), %s1010_s1, 768, %s178_s29, [#allocation6], %s1015_s7, %s1015_s7, %s766_s8  }
  0x1f   : > { %p31_p4 = scmp.ge.s32.totalorder %s30_s5, 2  ;;  %s42_s11 = sadd.s32 1, %s750_s17 }
  0x20   : > { %p49_p6 = scmp.ne.s32.totalorder %s750_s17, %s746_s16  ;;  %p50_p9 = scmp.eq.s32.totalorder %s762_s20, 0 }
  0x21   : > { %s1033_s5 = smov (%p31_p4, %s30_s5), 0  ;;  %p564_p0 = scmp.lt.s32.totalorder %s762_s20, 2 }
  0x22   : > { %p51_p12 = por %p50_p9, %p49_p6  ;;  %p884_p13 = por %p836_p2, %p49_p6 }
  0x23   : > { %s37_s13 = ssub.s32 %s758_s19, %s1033_s5  ;;  %s197_s14 = sand.u32 1, %s750_s17  }
  0x24   : > { %p40_p3 = scmp.eq.s32.totalorder %s37_s13, 0  ;;  %s539_s21 = smul.u32 48, %s197_s14 }
  0x25   : > { %s540_s28 = smul.u32 768, %s758_s19  ;;  %p896_p11 = pnand %p564_p0, %p51_p12 }
  0x26   : > { %s893_s22 = scalar_select %p40_p3, %s750_s17, %s42_s11  }
  0x27   : > { %s201_s29 = scalar_lea.vmem [#allocation2], %s539_s21  ;;  %s209_s10 = scalar_lea.hbm %s1009_s0, %s540_s28 }
  0x28   : > { %s210_s30 = sshll.u32 %s201_s29, 4  ;;  %s198_s7 = scalar_lea.sflag [#allocation3], %s197_s14  ;;  %s211_s30 = int_to_ptr.vmem [resolvable:$true] %s210_s30 }
  0x29   : > { %p652_p2 = pneg %p896_p11  ;;  %s663_s13 = scalar_lea.vmem %s211_s30, 768 }
  0x2a   : > { %p664_p5 = scmp.ne.s32.totalorder %s211_s30, %s663_s13  ;;  %s767_s11 = smov [#allocation2]  }
  0x2b   : > { %s668_s21 = sshll.u32 %s767_s11, 4  ;;  %s669_s21 = int_to_ptr.vmem [resolvable:$false] %s668_s21 }
  0x2c   : > { %p666_p7 = pnand %p664_p5, %p652_p2  ;;  %s670_s29 = scalar_lea.vmem %s669_s21, 1536 }
  0x2d   : > { %p671_p6 = scmp.lt.s32.totalorder %s211_s30, %s669_s21  ;;  %p672_p9 = scmp.lt.s32.totalorder %s670_s29, %s663_s13 }
  0x2e   : > { %p667_p4 = pneg %p666_p7 }
  0x2f   : > { %p673_p12 = por %p672_p9, %p671_p6 }
  0x31   : > { %p674_p0 = pnand %p673_p12, %p667_p4 }
  0x33   : > { %677 = shalt.err (!%p674_p0)
}
  0x34   : > { %s1024_s28 = smov 256   ;;  %222 = sbr.rel (%p852_p8) target bundleno = 288 (0x120), region = 36 }
  0x35   : > { %558 = dma.hbm_to_vmem [thread:$0]  (!%p896_p11), %s209_s10, 768, %s211_s30, %s198_s7, %s1024_s28, %s1024_s28, %s766_s8  }
  0x36   : > { %s913_s14 = sand.u32 (!%p852_p8), 1, %s746_s16   ;;  %p1025_p3 = scmp.ne.s32.totalorder (!%p852_p8), %s1018_s25, 0 }
  0x37   : > { %s541_s9 = smul.u32 (!%p852_p8), 48, %s913_s14  ;;  %s225_s24 = scalar_lea.sflag (!%p852_p8), [#allocation3], %s913_s14 }
  0x39   : > { %s228_s13 = scalar_lea.vmem [#allocation2], %s541_s9 }
  0x3a   : > { %729 = dma.done.wait (%p1025_p3), %s225_s24, 768  }
  0x3b   : > { %731 = vsyncadd (%p1025_p3), %s225_s24, 4294966528 }
  0x3c   : > { %733 = dma.done.wait (%p832_p1), [#allocation6], 768  }
  0x3d   : > { %735 = vsyncadd (%p832_p1), [#allocation6], 4294966528  ;;  %v768_v0 = vmov 0.0   ;;  %v769_v1 = vmov 0   ;;  %v927_v2 = vld [vmem:[%s228_s13 + $0x28] sm:$0xff]  ;;  %v929_v4 = vld [vmem:[%s228_s13 + $0x20] sm:$0xff] }
  0x3e   : > { %373 = vmatprep.mubr.f32.mxu0 %v768_v0  ;;  %379 = vmatprep.mubr.f32.mxu1 %v768_v0  ;;  %v271_v3 = vld [vmem:[#allocation5 + $0x28] sm:$0xff]  ;;  %v270_v6 = vld [vmem:[#allocation5 + $0x20] sm:$0xff]  ;;  %v269_v8 = vld [vmem:[#allocation5 + $0x18] sm:$0xff]  ;;  %vm299_vm0 = vcmask 195584   ;;  %s256_s24 = scalar_lea.vmem [#allocation7], %s541_s9  ;;  %s542_s23 = smul.u32 768, %s754_s18 }
  0x3f   : > { %622 = vset.pattern.permute.xlu0 %v769_v1  ;;  %623 = vset.pattern.permute.xlu1 %v769_v1  ;;  %v277_v5 = vmul.f32 %v271_v3, %v927_v2  ;;  %v263_v7 = vld [vmem:[%s228_s13 + $0x18] sm:$0xff]  ;;  %v276_v9 = vmul.f32 %v270_v6, %v929_v4  ;;  %v262_v11 = vld [vmem:[%s228_s13 + $0x10] sm:$0xff]  ;;  %v261_v13 = vld [vmem:[%s228_s13 + $0x8] sm:$0xff]  ;;  %s405_s27 = scalar_lea.sflag [#allocation4], %s913_s14  ;;  %s770_s8 = smov [#allocation7]  }
  0x40   : > { %v275_v10 = vmul.f32 %v269_v8, %v263_v7  ;;  %v268_v12 = vld [vmem:[#allocation5 + $0x10] sm:$0xff]  ;;  %v267_v15 = vld [vmem:[#allocation5 + $0x8] sm:$0xff]  ;;  %v266_v17 = vld [vmem:[#allocation5] sm:$0xff]  ;;  %s960_s25 = scalar_lea.hbm %s1013_s4, %s542_s23  ;;  %s682_s30 = sshll.u32 %s770_s8, 4  ;;  %s683_s30 = int_to_ptr.vmem [resolvable:$false] %s682_s30 }
  0x41   : > { %335 = vmatprep.subr.mxu0 %v277_v5  ;;  %533 = vmatprep.subr.mxu1 %v277_v5  ;;  %v274_v14 = vmul.f32 %v268_v12, %v262_v11  ;;  %v260_v16 = vld [vmem:[%s228_s13] sm:$0xff]  ;;  %v273_v18 = vmul.f32 %v267_v15, %v261_v13  ;;  %v279_v21 = vld [vmem:[%s1011_s2 + $0x8] sm:$0xff]  ;;  %s420_s13 = sshll.u32 %s256_s24, 4  ;;  %s684_s6 = scalar_lea.vmem %s683_s30, 1536  ;;  %s954_s13 = int_to_ptr.vmem [resolvable:$true] %s420_s13 }
  0x42   : > { %336 = vmatpush1.msra.mxu0 %v276_v9  ;;  %536 = vmatpush1.msra.mxu1 %v276_v9  ;;  %v272_v19 = vmul.f32 %v266_v17, %v260_v16  ;;  %v278_v20 = vld [vmem:[%s1011_s2] sm:$0xff]  ;;  %v283_v23 = vld [vmem:[%s1012_s3 + $0x10] sm:$0xff]  ;;  %v282_v25 = vld [vmem:[%s1012_s3 + $0x8] sm:$0xff]  ;;  %s678_s7 = scalar_lea.vmem %s954_s13, 768  ;;  %p685_p2 = scmp.lt.s32.totalorder %s954_s13, %s683_s30 }
  0x43   : > { %337 = vmatprep.subr.mxu0 %v275_v10  ;;  %534 = vmatprep.subr.mxu1 %v275_v10  ;;  %v281_v22 = vld [vmem:[%s1012_s3] sm:$0xff]  ;;  %v280_v24 = vld [vmem:[%s1011_s2 + $0x10] sm:$0xff]  ;;  %p679_p1 = scmp.ne.s32.totalorder %s954_s13, %s678_s7  ;;  %p686_p5 = scmp.lt.s32.totalorder %s684_s6, %s678_s7 }
  0x44   : > { %338 = vmatpush1.msra.mxu0 %v274_v14  ;;  %537 = vmatpush1.msra.mxu1 %v274_v14 }
  0x45   : > { %339 = vmatprep.subr.mxu0 %v273_v18  ;;  %535 = vmatprep.subr.mxu1 %v273_v18  ;;  %p680_p8 = pnand %p679_p1, %p884_p13  ;;  %p687_p7 = por %p686_p5, %p685_p2 }
  0x46   : > { %340 = vmatpush1.msra.mxu0 %v272_v19  ;;  %538 = vmatpush1.msra.mxu1 %v272_v19 }
  0x47   : > { %527 = vmatmul.mubr.msk.f32.vlgmr.msra.gmra.mxu0 %vm299_vm0, %v278_v20  ;;  %528 = vmatmul.mubr.msk.f32.vlgmr.msra.gmra.mxu1 %vm299_vm0, %v279_v21  ;;  %p681_p11 = pneg %p680_p8 }
  0x48   : > { %385 = vmatprep.mubr.f32.mxu1 %v768_v0  ;;  %286 = vperm.xlu0 %622, %v281_v22  }
  0x49   : > { %296 = vperm.xlu1 %623, %v283_v23   ;;  %p688_p4 = pnand %p687_p7, %p681_p11 }
  0x4b   : > { %529 = vmatmul.mubr.msk.f32.gmra.mxu1 %vm299_vm0, %v280_v24 }
  0x4c   : > { %291 = vperm.xlu0 %622, %v282_v25  }
  0xc3   : > { %v287_v26 = vpop.permute.xlu0 %286 }
  0xc4   : > { %v297_v32 = vpop.permute.xlu1 %296 }
  0xc7   : > { %v292_v27 = vpop.permute.xlu0 %291 }
 0x107   : > { %v375_v28 = vpop.f32.mrf.mxu0  ;;  %v381_v29 = vpop.f32.mrf.mxu1 }
 0x108   : > { %v376_v30 = vadd.f32 %v375_v28, %v287_v26  ;;  %v382_v31 = vadd.f32 %v381_v29, %v292_v27 }
 0x109   : > { %v377_v33 = vpop.f32.mrf.mxu0  ;;  %v383_v34 = vpop.f32.mrf.mxu1 }
 0x10a   : > { %v392_v35 = vadd.f32 %v376_v30, %v260_v16  ;;  %v394_v36 = vadd.f32 %v382_v31, %v262_v11  ;;  %v378_v37 = vadd.f32 %v377_v33, %v287_v26  ;;  %v384_v38 = vadd.f32 %v383_v34, %v292_v27 }
 0x10b   : > { %v387_v39 = vpop.f32.mrf.mxu1 }
 0x10c   : > { %398 = vst [vmem:[%s256_s24] sm:$0xff] %v392_v35  ;;  %400 = vst [vmem:[%s256_s24 + $0x10] sm:$0xff] %v394_v36  ;;  %v393_v40 = vadd.f32 %v378_v37, %v261_v13  ;;  %v395_v41 = vadd.f32 %v384_v38, %v263_v7  ;;  %v388_v42 = vadd.f32 %v387_v39, %v297_v32 }
 0x10d   : > { %v389_v43 = vpop.f32.mrf.mxu1 }
 0x10e   : > { %399 = vst [vmem:[%s256_s24 + $0x8] sm:$0xff] %v393_v40  ;;  %401 = vst [vmem:[%s256_s24 + $0x18] sm:$0xff] %v395_v41  ;;  %v396_v44 = vadd.f32 %v388_v42, %v929_v4  ;;  %v390_v45 = vadd.f32 %v389_v43, %v297_v32 }
 0x110   : > { %402 = vst [vmem:[%s256_s24 + $0x20] sm:$0xff] %v396_v44  ;;  %v397_v46 = vadd.f32 %v390_v45, %v927_v2 }
 0x112   : > { %403 = vst [vmem:[%s256_s24 + $0x28] sm:$0xff] %v397_v46 }
 0x113   : > { %691 = shalt.err (!%p688_p4)
}
 0x114   : > { %s692_s10 = scalar_lea.hbm %s960_s25, 768  ;;  %s696_s29 = scalar_lea.hbm %s1013_s4, 1536 }
 0x115   : > { %p693_p6 = scmp.ne.s32.totalorder %s960_s25, %s692_s10  ;;  %p697_p0 = scmp.lt.s32.totalorder %s960_s25, %s1013_s4 }
 0x116   : > { %p698_p3 = scmp.lt.s32.totalorder %s696_s29, %s692_s10 }
 0x117   : > { %p694_p9 = pnand %p693_p6, %p884_p13 }
 0x118   : > { %p699_p1 = por %p698_p3, %p697_p0 }
 0x119   : > { %p695_p12 = pneg %p694_p9 }
 0x11b   : > { %p700_p8 = pnand %p699_p1, %p695_p12 }
 0x11d   : > { %703 = shalt.err (!%p700_p8)
}
 0x11e   : > { %s771_s23 = smov 256   ;;  %s772_s9 = smov 16  }
 0x11f   : > { %549 = dma.vmem_to_hbm [thread:$0]  (%p884_p13), %s954_s13, 768, %s960_s25, %s405_s27, %s771_s23, %s771_s23, %s772_s9  }
 0x120 PF: > { %s435_s18 = sand.u32 1, %s742_s15   ;;  %p1026_p11 = scmp.ne.s32.totalorder %s1019_s26, 0 }
 0x121   : > { %s436_s7 = scalar_lea.sflag [#allocation4], %s435_s18 }
 0x122   : > { %p560_p2 = pnand %p523_p10, %p1026_p11 }
 0x124   : > { %p561_p5 = pneg %p560_p2 }
 0x126   : > { %737 = dma.done.wait (%p561_p5), %s436_s7, 768  }
 0x127   : > { %739 = vsyncadd (%p561_p5), %s436_s7, 4294966528  ;;  %s21_s20 = sadd.s32 1, %s762_s20   ;;  %s1027_s15 = smov %s746_s16 }
 0x128   : > { %p18_p7 = scmp.ge.s32.totalorder %s21_s20, 4   ;;  %s1028_s16 = smov %s750_s17 }
 0x129   : > { %s1029_s17 = smov %s893_s22  ;;  %s1030_s18 = smov %s758_s19 }
 0x12a   : > { %s1031_s19 = smov %s1033_s5  ;;  %20 = sbr.rel (!%p18_p7) target bundleno = 7 (0x7), region = 86 }
 0x12f   :  { %441 = vsyncpa [#allocation3], 1 }
 0x130   :  { %443 = vsyncpa [#allocation3 + $0x1], 1 }
 0x131   :  { %444 = vsyncpa [#allocation6], 1 }
 0x132   :  { %445 = vsyncpa [#allocation4], 1 }
 0x133   :  { %447 = vsyncpa [#allocation4 + $0x1], 1 }

</bundles_post_ra>
